<compile_context>
chip_gen: v7x
topology: tpu7x:2x2x1
jax: 0.10.0
libtpu: 0.0.40
codegen_flags: <defaults>
</compile_context>

<pallas_src>
import math

import jax
import jax.numpy as jnp
from jax.experimental import pallas as pl
from jax.experimental.pallas import tpu as pltpu

_SHIFT = math.log(2.0)

_TARGET_BLOCK_BYTES = 4 * 1024 * 1024     # ~4 MiB per buffer (f32-equivalent)
_VMEM_LIMIT_BYTES = 48 * 1024 * 1024      # explicit: > v5e's 16 MiB scoped default


def _cdiv(a, b):
    return -(-a // b)


def _round_up(a, b):
    return _cdiv(a, b) * b


def _shifted_softplus_kernel(x_ref, o_ref):
    # Compute in f32 regardless of storage dtype; numerically stable softplus:
    #   log(1 + exp(x)) = max(x, 0) + log1p(exp(-|x|))
    x = x_ref[...].astype(jnp.float32)
    sp = jnp.maximum(x, 0.0) + jnp.log1p(jnp.exp(-jnp.abs(x)))
    o_ref[...] = (sp - _SHIFT).astype(o_ref.dtype)


def _is_multi_tensorcore():
    """Best-effort: does one device expose >1 TensorCore (v7x / megacore)?"""
    try:
        kind = (getattr(jax.devices()[0], "device_kind", "") or "").lower()
        return ("v7" in kind) or ("7x" in kind) or ("v4" in kind) or ("v5p" in kind)
    except Exception:
        # Harmless default: prefer >=2 even grid steps (costs <1 us on 1-TC chips).
        return True


def _choose_block_rows(rows8, bytes_per_row, multi_tc):
    """Pick a sublane-aligned row count per block, ~_TARGET_BLOCK_BYTES each."""
    tr = max(8, (_TARGET_BLOCK_BYTES // max(bytes_per_row, 1)) // 8 * 8)
    tr = min(tr, rows8)
    if multi_tc and rows8 > 8:
        # On 2-TC chips make the "parallel" grid axis split into an even number
        # of steps so neither core gets a straggler.
        g = _cdiv(rows8, tr)
        if g % 2 == 1:
            tr_even = max(8, _cdiv(_cdiv(rows8, g + 1), 8) * 8)
            if _cdiv(rows8, tr_even) % 2 == 0:
                tr = tr_even
    return tr


def _run_2d(x2, cols_eff, multi_tc):
    """Run the kernel over a 2-D view. Block dims are always legal:
    row dim is a multiple of 8, col dim is either a multiple of 128 or the
    full array width; ragged boundary blocks are masked by Pallas."""
    rows, cols = x2.shape
    dtype = x2.dtype
    dtype_bytes = jnp.dtype(dtype).itemsize
    rows8 = _round_up(rows, 8)
    # Size blocks by f32-equivalent bytes: in-kernel temporaries are f32, so
    # this bounds VMEM pressure uniformly for bf16/f32 inputs.
    bytes_per_row = cols_eff * max(dtype_bytes, 4)
    tr = _choose_block_rows(rows8, bytes_per_row, multi_tc)
    grid = (_cdiv(rows, tr),)

    cost = pl.CostEstimate(
        flops=3 * rows * cols,
        transcendentals=2 * rows * cols,
        bytes_accessed=2 * rows * cols * dtype_bytes,
    )

    return pl.pallas_call(
        _shifted_softplus_kernel,
        out_shape=jax.ShapeDtypeStruct((rows, cols), dtype),
        grid=grid,
        in_specs=[pl.BlockSpec((tr, cols), lambda i: (i, 0))],
        out_specs=pl.BlockSpec((tr, cols), lambda i: (i, 0)),
        compiler_params=pltpu.CompilerParams(
            dimension_semantics=("parallel",),
            vmem_limit_bytes=_VMEM_LIMIT_BYTES,
        ),
        cost_estimate=cost,
    )(x2)


def shifted_softplus(x):
    """ShiftedSoftplus via a tiled Pallas TPU kernel (any rank), zero-copy
    wrapper in the common cases (no jnp.pad / output slice)."""
    orig_shape = x.shape
    n = x.size
    if n == 0:
        return x
    multi_tc = _is_multi_tensorcore()

    # Path A: lane-aligned flat view (zero-copy), widest cols that divide n.
    if n % 128 == 0:
        cols = 128
        for c in (1024, 512, 256):
            if n % c == 0:
                cols = c
                break
        out = _run_2d(x.reshape(n // cols, cols), cols_eff=cols, multi_tc=multi_tc)
        return out.reshape(orig_shape)

    # Path B: natural trailing-dim view (zero-copy); block last dim == full C,
    # which is legal even when C is not a multiple of 128 (stores lane-masked).
    if x.ndim >= 2:
        C = orig_shape[-1]
        R = n // C
        out = _run_2d(x.reshape(R, C), cols_eff=_round_up(C, 128), multi_tc=multi_tc)
        return out.reshape(orig_shape)

    # Path C: 1-D ragged fallback (only case that still pads + slices).
    pad = (-n) % 128
    flat = jnp.pad(x.reshape(-1), (0, pad))
    out = _run_2d(flat.reshape(-1, 128), cols_eff=128, multi_tc=multi_tc)
    return out.reshape(-1)[:n].reshape(orig_shape)


def _ref(x):
    return (jax.nn.softplus(x.astype(jnp.float32)) - _SHIFT).astype(x.dtype)


if __name__ == "__main__":
    key = jax.random.PRNGKey(0)
    k1, k2, k3, k4, k5 = jax.random.split(key, 5)

    # 1) SchNet-like: [num_nodes, hidden=64] -> Path A (n % 128 == 0).
    x1 = jax.random.normal(k1, (16, 64), dtype=jnp.float32) * 3.0
    y1 = shifted_softplus(x1)
    jax.block_until_ready(y1)
    assert jnp.allclose(y1, _ref(x1), atol=1e-5, rtol=1e-5), "mismatch (case 1)"

    # 2) Ragged element count -> Path B (natural (R, C) view, zero-copy).
    x2 = jax.random.normal(k2, (203, 96), dtype=jnp.float32) * 3.0
    y2 = shifted_softplus(x2)
    jax.block_until_ready(y2)
    assert jnp.allclose(y2, _ref(x2), atol=1e-5, rtol=1e-5), "mismatch (case 2)"

    # 3) bf16, odd node count with hidden=64 -> Path B with lane-masked stores.
    x3 = (jax.random.normal(k3, (7, 64), dtype=jnp.float32) * 3.0).astype(jnp.bfloat16)
    y3 = shifted_softplus(x3)
    jax.block_until_ready(y3)
    assert jnp.allclose(y3.astype(jnp.float32), _ref(x3).astype(jnp.float32),
                        atol=2e-2, rtol=2e-2), "mismatch (case 3)"

    # 4) 1-D ragged -> Path C fallback.
    x4 = jax.random.normal(k4, (1000,), dtype=jnp.float32) * 3.0
    y4 = shifted_softplus(x4)
    jax.block_until_ready(y4)
    assert jnp.allclose(y4, _ref(x4), atol=1e-5, rtol=1e-5), "mismatch (case 4)"

    # 5) Higher-rank input -> Path A with wide lane-dense cols.
    x5 = jax.random.normal(k5, (2, 4, 256), dtype=jnp.float32) * 3.0
    y5 = shifted_softplus(x5)
    jax.block_until_ready(y5)
    assert jnp.allclose(y5, _ref(x5), atol=1e-5, rtol=1e-5), "mismatch (case 5)"

    print("KERNEL_OK")
</pallas_src>

<mosaic_0001>
module attributes {stable_mosaic.version = 11 : i64} {
  func.func @_shifted_softplus_kernel(%arg0: i32, %arg1: memref<8x1024xf32, #tpu.memory_space<vmem>>, %arg2: memref<8x1024xf32, #tpu.memory_space<vmem>>) attributes {dimension_semantics = [#tpu.dimension_semantics<parallel>], iteration_bounds = array<i64: 1>, scalar_prefetch = 0 : i64, scratch_operands = 0 : i64, tpu.core_type = #tpu.core_type<tc>, window_params = [{transform_indices = @transform_0, window_bounds = array<i64: 8, 1024>}, {transform_indices = @transform_1, window_bounds = array<i64: 8, 1024>}]} {
    %c0 = arith.constant 0 : index
    %c0_0 = arith.constant 0 : index
    %0 = vector.load %arg1[%c0, %c0_0] : memref<8x1024xf32, #tpu.memory_space<vmem>>, vector<8x1024xf32>
    %cst = arith.constant 0.000000e+00 : f32
    %1 = vector.broadcast %cst : f32 to vector<8x1024xf32>
    %2 = arith.maximumf %0, %1 : vector<8x1024xf32>
    %3 = math.absf %0 : vector<8x1024xf32>
    %cst_1 = arith.constant 0.000000e+00 : f32
    %4 = vector.broadcast %cst_1 : f32 to vector<8x1024xf32>
    %5 = arith.subf %4, %3 : vector<8x1024xf32>
    %6 = math.exp %5 : vector<8x1024xf32>
    %7 = math.log1p %6 : vector<8x1024xf32>
    %8 = arith.addf %2, %7 : vector<8x1024xf32>
    %cst_2 = arith.constant 0.693147182 : f32
    %9 = vector.broadcast %cst_2 : f32 to vector<8x1024xf32>
    %10 = arith.subf %8, %9 : vector<8x1024xf32>
    %c0_3 = arith.constant 0 : index
    %c0_4 = arith.constant 0 : index
    %11 = vector.load %arg2[%c0_3, %c0_4] : memref<8x1024xf32, #tpu.memory_space<vmem>>, vector<8x1024xf32>
    tpu.vector_store %arg2[%c0_3, %c0_4], %10 {strides = array<i32>} : memref<8x1024xf32, #tpu.memory_space<vmem>>, vector<8x1024xf32>,
    return
  }
  func.func @transform_0(%arg0: i32) -> (i32, i32) {
    %c0_i32 = arith.constant 0 : i32
    %c0_i32_0 = arith.constant 0 : i32
    return %arg0, %c0_i32 : i32, i32
  }
  func.func @transform_1(%arg0: i32) -> (i32, i32) {
    %c0_i32 = arith.constant 0 : i32
    %c0_i32_0 = arith.constant 0 : i32
    return %arg0, %c0_i32 : i32, i32
  }
}

</mosaic_0001>

<bundles_post_ra>
// kernel: tpu_custom_call.1
= control target key start
LH: loop header
LB: loop body
LE: loop exit
PB: predicated region body
PF: predicated region fallthrough
CT: control target
= control target key end

     0   :  { %6 = vsyncpa [#allocation3], 0  ;;  %s412_s0 = inlined_call_operand.hbm [shape: f32[1,1024], index: 0, kind: input, shape index: {}]   ;;  %s413_s1 = inlined_call_operand.hbm [shape: f32[1,1024], index: 1, kind: output, shape index: {}]  }
   0x1   :  { %7 = vsyncpa [#allocation4], 0 }
   0x2   :  { %12 = vsyncadd [#allocation3], 896  ;;  %s276_s6 = smov [#allocation2]   ;;  %s228_s10 = scalar_lea.hbm %s412_s0, 128 }
   0x3   :  { %s13_s7 = sshll.u32 %s276_s6, 4  ;;  %p229_p0 = scmp.ne.s32.totalorder %s412_s0, %s228_s10  ;;  %s14_s7 = int_to_ptr.vmem [resolvable:$true] %s13_s7 }
   0x4   :  { %p232_p1 = scmp.lt.u32.totalorder %s228_s10, %s412_s0 }
   0x6   :  { %p234_p2 = pnand %p232_p1, %p229_p0 }
   0x8   :  { %237 = shalt.err (!%p234_p2)
}
   0x9   :  { %s238_s15 = scalar_lea.vmem %s14_s7, 128  ;;  %s242_s16 = scalar_lea.vmem %s14_s7, 1024 }
   0xa   :  { %p239_p3 = scmp.ne.s32.totalorder %s14_s7, %s238_s15  ;;  %p243_p4 = scmp.lt.s32.totalorder %s14_s7, %s14_s7 }
   0xb   :  { %p244_p5 = scmp.lt.s32.totalorder %s242_s16, %s238_s15 }
   0xd   :  { %p245_p6 = por %p244_p5, %p243_p4 }
   0xf   :  { %p246_p7 = pnand %p245_p6, %p239_p3 }
  0x11   :  { %249 = shalt.err (!%p246_p7)
}
  0x12   :  { %s277_s17 = smov 128   ;;  %s278_s18 = smov 8  }
  0x13   :  { %19 = dma.hbm_to_vmem [thread:$0]  %s412_s0, 128, %s14_s7, [#allocation3], %s277_s17, %s277_s17, %s278_s18  }
  0x14   :  { %272 = dma.done.wait [#allocation3], 1024  }
  0x15   :  { %273 = vsyncadd [#allocation3], 4294966272  ;;  %v305_v0 = vld [vmem:[#allocation2] sm:$0xff]  ;;  %v307_v1 = vld [vmem:[#allocation2 + $0x8] sm:$0xff] }
  0x16   :  { %v309_v2 = vld [vmem:[#allocation2 + $0x10] sm:$0xff]  ;;  %v39_v3 = vand.u32 2147483647, %v305_v0  ;;  %v40_v4 = vand.u32 2147483647, %v307_v1  ;;  %v314_v6 = vld [vmem:[#allocation2 + $0x18] sm:$0xff] }
  0x17   :  { %v41_v5 = vand.u32 2147483647, %v309_v2  ;;  %v316_v7 = vld [vmem:[#allocation2 + $0x20] sm:$0xff]  ;;  %v42_v10 = vand.u32 2147483647, %v314_v6  ;;  %v319_v11 = vld [vmem:[#allocation2 + $0x28] sm:$0xff] }
  0x18   :  { %v47_v8 = vsub.f32 0.0, %v39_v3  ;;  %v48_v9 = vsub.f32 0.0, %v40_v4  ;;  %v43_v13 = vand.u32 2147483647, %v316_v7  ;;  %v322_v14 = vld [vmem:[#allocation2 + $0x30] sm:$0xff]  ;;  %v324_v15 = vld [vmem:[#allocation2 + $0x38] sm:$0xff] }
  0x19   :  { %v49_v12 = vsub.f32 0.0, %v41_v5  ;;  %v50_v18 = vsub.f32 0.0, %v42_v10  ;;  %v44_v21 = vand.u32 2147483647, %v319_v11  ;;  %v45_v23 = vand.u32 2147483647, %v322_v14 }
  0x1a   :  { %v55_v16 = vmul.f32 1.442695, %v47_v8  ;;  %v57_v17 = vmul.f32 1.442695, %v48_v9  ;;  %v51_v20 = vsub.f32 0.0, %v43_v13  ;;  %v31_v42 = vmax.f32 %v305_v0, 0.0 }
  0x1b   :  { %v59_v19 = vmul.f32 1.442695, %v49_v12  ;;  %v61_v22 = vmul.f32 1.442695, %v50_v18  ;;  %v46_v24 = vand.u32 2147483647, %v324_v15 }
  0x1c   :  { %196 = vpow2.f32 %v55_v16  ;;  %v63_v25 = vmul.f32 1.442695, %v51_v20  ;;  %v52_v26 = vsub.f32 0.0, %v44_v21  ;;  %v53_v27 = vsub.f32 0.0, %v45_v23 }
  0x1d   :  { %198 = vpow2.f32 %v57_v17  ;;  %v54_v28 = vsub.f32 0.0, %v46_v24  ;;  %v32_v43 = vmax.f32 %v307_v1, 0.0  ;;  %v33_v47 = vmax.f32 %v309_v2, 0.0 }
  0x1e   :  { %200 = vpow2.f32 %v59_v19  ;;  %v65_v29 = vmul.f32 1.442695, %v52_v26  ;;  %v67_v30 = vmul.f32 1.442695, %v53_v27  ;;  %v34_v49 = vmax.f32 %v314_v6, 0.0 }
  0x1f   :  { %202 = vpow2.f32 %v61_v22  ;;  %v69_v31 = vmul.f32 1.442695, %v54_v28  ;;  %v35_v56 = vmax.f32 %v316_v7, 0.0  ;;  %v36_v57 = vmax.f32 %v319_v11, 0.0 }
  0x20   :  { %204 = vpow2.f32 %v63_v25  ;;  %v37_v62 = vmax.f32 %v322_v14, 0.0  ;;  %v38_v2 = vmax.f32 %v324_v15, 0.0 }
  0x21   :  { %206 = vpow2.f32 %v65_v29 }
  0x22   :  { %208 = vpow2.f32 %v67_v30 }
  0x23   :  { %210 = vpow2.f32 %v69_v31 }
  0x26   :  { %v197_v32 = vpop.eup %196 }
  0x27   :  { %v199_v33 = vpop.eup %198  ;;  %v71_v34 = vadd.f32 1.0, %v197_v32  ;;  %v74_v40 = vmul.f32 -0.5, %v197_v32  ;;  %v77_v46 = vand.u32 2147483647, %v197_v32 }
  0x28   :  { %v201_v35 = vpop.eup %200  ;;  %v80_v36 = vadd.f32 1.0, %v199_v33  ;;  %v83_v41 = vmul.f32 -0.5, %v199_v33  ;;  %v86_v51 = vand.u32 2147483647, %v199_v33 }
  0x29   :  { %v203_v37 = vpop.eup %202  ;;  %212 = vlog2.f32 %v71_v34  ;;  %v89_v38 = vadd.f32 1.0, %v201_v35  ;;  %v92_v48 = vmul.f32 -0.5, %v201_v35  ;;  %v75_v54 = vadd.f32 1.0, %v74_v40 }
  0x2a   :  { %v205_v39 = vpop.eup %204  ;;  %214 = vlog2.f32 %v80_v36  ;;  %v98_v44 = vadd.f32 1.0, %v203_v37  ;;  %v101_v52 = vmul.f32 -0.5, %v203_v37  ;;  %v84_v55 = vadd.f32 1.0, %v83_v41 }
  0x2b   :  { %216 = vlog2.f32 %v89_v38  ;;  %v331_v45 = vpop.eup %206  ;;  %v107_v53 = vadd.f32 1.0, %v205_v39  ;;  %v95_v59 = vand.u32 2147483647, %v201_v35  ;;  %v110_v60 = vmul.f32 -0.5, %v205_v39 }
  0x2c   :  { %v335_v50 = vpop.eup %208  ;;  %218 = vlog2.f32 %v98_v44  ;;  %v116_v61 = vadd.f32 1.0, %v331_v45  ;;  %vm342_vm0 = vcmp.lt.f32.partialorder %v77_v46, 0.0004427343  ;;  %v93_v63 = vadd.f32 1.0, %v92_v48 }
  0x2d   :  { %v339_v58 = vpop.eup %210  ;;  %220 = vlog2.f32 %v107_v53  ;;  %v104_v0 = vand.u32 2147483647, %v203_v37  ;;  %v125_v1 = vadd.f32 1.0, %v335_v50  ;;  %vm347_vm1 = vcmp.lt.f32.partialorder %v86_v51, 0.0004427343 }
  0x2e   :  { %v102_v3 = vadd.f32 1.0, %v101_v52  ;;  %222 = vlog2.f32 %v116_v61  ;;  %v119_v4 = vmul.f32 -0.5, %v331_v45  ;;  %v76_v5 = vmul.f32 %v197_v32, %v75_v54 }
  0x2f   :  { %v113_v8 = vand.u32 2147483647, %v205_v39  ;;  %224 = vlog2.f32 %v125_v1  ;;  %v134_v9 = vadd.f32 1.0, %v339_v58  ;;  %v85_v12 = vmul.f32 %v199_v33, %v84_v55 }
  0x30   :  { %vm353_vm2 = vcmp.lt.f32.partialorder %v95_v59, 0.0004427343  ;;  %v111_v16 = vadd.f32 1.0, %v110_v60  ;;  %v128_v17 = vmul.f32 -0.5, %v335_v50  ;;  %v94_v20 = vmul.f32 %v201_v35, %v93_v63 }
  0x31   :  { %vm358_vm3 = vcmp.lt.f32.partialorder %v104_v0, 0.0004427343  ;;  %226 = vlog2.f32 %v134_v9  ;;  %v103_v24 = vmul.f32 %v203_v37, %v102_v3  ;;  %v120_v25 = vadd.f32 1.0, %v119_v4 }
  0x32   :  { %v137_v26 = vmul.f32 -0.5, %v339_v58  ;;  %vm365_vm4 = vcmp.lt.f32.partialorder %v113_v8, 0.0004427343  ;;  %v122_v30 = vand.u32 2147483647, %v331_v45  ;;  %v112_v34 = vmul.f32 %v205_v39, %v111_v16 }
  0x33   :  { %v213_v10 = vpop.eup %212  ;;  %v129_v35 = vadd.f32 1.0, %v128_v17  ;;  %v131_v40 = vand.u32 2147483647, %v335_v50  ;;  %v121_v48 = vmul.f32 %v331_v45, %v120_v25  ;;  %v140_v39 = vand.u32 2147483647, %v339_v58 }
  0x34   :  { %v215_v18 = vpop.eup %214  ;;  %v73_v19 = vmul.f32 0.6931472, %v213_v10  ;;  %v138_v51 = vadd.f32 1.0, %v137_v26  ;;  %vm381_vm5 = vcmp.lt.f32.partialorder %v122_v30, 0.0004427343 }
  0x35   :  { %v217_v22 = vpop.eup %216  ;;  %v82_v23 = vmul.f32 0.6931472, %v215_v18  ;;  %v130_v45 = vmul.f32 %v335_v50, %v129_v35  ;;  %vm132_vm6 = vcmp.lt.f32.partialorder %v131_v40, 0.0004427343  ;;  %vm141_vm7 = vcmp.lt.f32.partialorder %v140_v39, 0.0004427343 }
  0x36   :  { %v79_v27 = vsel %vm342_vm0, %v76_v5, %v73_v19  ;;  %v91_v28 = vmul.f32 0.6931472, %v217_v22  ;;  %v219_v31 = vpop.eup %218  ;;  %v139_v0 = vmul.f32 %v339_v58, %v138_v51 }
  0x37   :  { %v143_v32 = vadd.f32 %v79_v27, %v31_v42  ;;  %v88_v33 = vsel %vm347_vm1, %v85_v12, %v82_v23  ;;  %v100_v38 = vmul.f32 0.6931472, %v219_v31  ;;  %v221_v41 = vpop.eup %220 }
  0x38   :  { %v144_v36 = vadd.f32 %v88_v33, %v32_v43  ;;  %v97_v37 = vsel %vm353_vm2, %v94_v20, %v91_v28  ;;  %v109_v53 = vmul.f32 0.6931472, %v221_v41  ;;  %v223_v43 = vpop.eup %222 }
  0x39   :  { %v184_v44 = vadd.f32 -0.6931472, %v143_v32  ;;  %v145_v46 = vadd.f32 %v97_v37, %v33_v47  ;;  %v106_v42 = vsel %vm358_vm3, %v103_v24, %v100_v38  ;;  %v225_v47 = vpop.eup %224  ;;  %v118_v61 = vmul.f32 0.6931472, %v223_v43 }
  0x3a   :  { %v185_v52 = vadd.f32 -0.6931472, %v144_v36  ;;  %v146_v55 = vadd.f32 %v106_v42, %v34_v49  ;;  %v115_v60 = vsel %vm365_vm4, %v112_v34, %v109_v53  ;;  %v127_v49 = vmul.f32 0.6931472, %v225_v47 }
  0x3b   :  { %159 = vst [vmem:[#allocation5] sm:$0xff] %v184_v44  ;;  %v186_v54 = vadd.f32 -0.6931472, %v145_v46  ;;  %v147_v6 = vadd.f32 %v115_v60, %v35_v56  ;;  %v227_v1 = vpop.eup %226  ;;  %v124_v50 = vsel %vm381_vm5, %v121_v48, %v118_v61 }
  0x3c   :  { %160 = vst [vmem:[#allocation5 + $0x8] sm:$0xff] %v185_v52  ;;  %v187_v63 = vadd.f32 -0.6931472, %v146_v55  ;;  %v148_v14 = vadd.f32 %v124_v50, %v36_v57  ;;  %v133_v4 = vsel %vm132_vm6, %v130_v45, %v127_v49  ;;  %v136_v5 = vmul.f32 0.6931472, %v227_v1 }
  0x3d   :  { %161 = vst [vmem:[#allocation5 + $0x10] sm:$0xff] %v186_v54  ;;  %v188_v3 = vadd.f32 -0.6931472, %v147_v6  ;;  %v149_v8 = vadd.f32 %v133_v4, %v37_v62 }
  0x3e   :  { %162 = vst [vmem:[#allocation5 + $0x18] sm:$0xff] %v187_v63  ;;  %v189_v7 = vadd.f32 -0.6931472, %v148_v14  ;;  %v142_v56 = vsel %vm141_vm7, %v139_v0, %v136_v5 }
  0x3f   :  { %163 = vst [vmem:[#allocation5 + $0x20] sm:$0xff] %v188_v3  ;;  %v190_v9 = vadd.f32 -0.6931472, %v149_v8  ;;  %v150_v58 = vadd.f32 %v142_v56, %v38_v2 }
  0x40   :  { %164 = vst [vmem:[#allocation5 + $0x28] sm:$0xff] %v189_v7 }
  0x41   :  { %165 = vst [vmem:[#allocation5 + $0x30] sm:$0xff] %v190_v9  ;;  %v191_v10 = vadd.f32 -0.6931472, %v150_v58 }
  0x43   :  { %166 = vst [vmem:[#allocation5 + $0x38] sm:$0xff] %v191_v10 }
  0x44   :  { %171 = vsyncadd [#allocation4], 896  ;;  %s279_s0 = smov [#allocation5]  }
  0x45   :  { %s172_s21 = sshll.u32 %s279_s0, 4  ;;  %s173_s21 = int_to_ptr.vmem [resolvable:$true] %s172_s21 }
  0x46   :  { %s250_s22 = scalar_lea.vmem %s173_s21, 128  ;;  %s254_s23 = scalar_lea.vmem %s173_s21, 1024 }
  0x47   :  { %p251_p8 = scmp.ne.s32.totalorder %s173_s21, %s250_s22  ;;  %p255_p9 = scmp.lt.s32.totalorder %s173_s21, %s173_s21 }
  0x48   :  { %p256_p10 = scmp.lt.s32.totalorder %s254_s23, %s250_s22 }
  0x4a   :  { %p257_p11 = por %p256_p10, %p255_p9 }
  0x4c   :  { %p258_p12 = pnand %p257_p11, %p251_p8 }
  0x4e   :  { %261 = shalt.err (!%p258_p12)
}
  0x4f   :  { %s262_s26 = scalar_lea.hbm %s413_s1, 128 }
  0x50   :  { %p263_p13 = scmp.ne.s32.totalorder %s413_s1, %s262_s26  ;;  %p266_p0 = scmp.lt.u32.totalorder %s262_s26, %s413_s1 }
  0x52   :  { %p268_p1 = pnand %p266_p0, %p263_p13 }
  0x54   :  { %271 = shalt.err (!%p268_p1)
}
  0x55   :  { %178 = dma.vmem_to_hbm [thread:$0]  %s173_s21, 128, %s413_s1, [#allocation4], %s277_s17, %s277_s17, %s278_s18  }
  0x56   :  { %274 = dma.done.wait [#allocation4], 1024  }
  0x57   :  { %275 = vsyncadd [#allocation4], 4294966272 }
  0x58   :  { %182 = vsyncpa [#allocation3], 1 }
  0x59   :  { %183 = vsyncpa [#allocation4], 1 }

</bundles_post_ra>
